<compile_context>
chip_gen: v7x
topology: tpu7x:2x2x1
jax: 0.10.0
libtpu: 0.0.40
codegen_flags: <defaults>
</compile_context>

<pallas_src>
import jax
import jax.numpy as jnp
from jax import lax
from jax.experimental import pallas as pl
from jax.experimental.pallas import tpu as pltpu


# ----------------------------- kernels ------------------------------------ #

def _matmul_tile(x_ref, w_ref):
    # x_ref: (tm, tk); w_ref: (tn, tk) in PyTorch (OUT, IN) layout.
    # Contract dim 1 of both operands -> (tm, tn). This is the transposed-
    # operand MXU path (like q @ k^T); no per-step XLU transpose of W.
    return lax.dot_general(
        x_ref[...], w_ref[...],
        dimension_numbers=(((1,), (1,)), ((), ())),
        preferred_element_type=jnp.float32)


def _kernel_direct(x_ref, w_ref, b_ref, o_ref):
    """Accumulate straight into o_ref (f32 output, or a single K step)."""
    k = pl.program_id(2)

    @pl.when(k == 0)
    def _():
        o_ref[...] = jnp.zeros_like(o_ref)

    o_ref[...] += _matmul_tile(x_ref, w_ref).astype(o_ref.dtype)

    @pl.when(k == pl.num_programs(2) - 1)
    def _():
        o_ref[...] = jnp.maximum(o_ref[...] + b_ref[...], 0.0).astype(o_ref.dtype)


def _kernel_acc(x_ref, w_ref, b_ref, o_ref, acc_ref):
    """f32 scratch accumulator (only for low-precision outputs with split K)."""
    k = pl.program_id(2)

    @pl.when(k == 0)
    def _():
        acc_ref[...] = jnp.zeros_like(acc_ref)

    acc_ref[...] += _matmul_tile(x_ref, w_ref)

    @pl.when(k == pl.num_programs(2) - 1)
    def _():
        o_ref[...] = jnp.maximum(acc_ref[...] + b_ref[...], 0.0).astype(o_ref.dtype)


# ----------------------------- planning ----------------------------------- #

def _round_up(v, a):
    return -(-v // a) * a


def _vmem_capacity_bytes():
    try:
        cap = getattr(pltpu.get_tpu_info(), "vmem_capacity_bytes", None)
        if cap:
            return int(cap)
    except Exception:
        pass
    return 64 << 20   # conservative fallback: v7x per-TensorCore VMEM


def _candidates(full, steps):
    vals = {full} | {s for s in steps if s < full}
    return sorted(vals, reverse=True)


def _plan_tiles(B, IN, OUT, in_isz, out_isz, out_is_f32, budget):
    """Pick (tm, tn, tk, use_acc, vmem_need) minimizing modeled HBM traffic
    under the VMEM budget.  With grid order (j, i, k):
      weight traffic = OUT*IN            if K unsplit (W read once),
                       OUT*IN * (B/tm)   if K split (grow tm to amortize),
      x traffic      = B*IN * (OUT/tn),
      output traffic = B*OUT.
    """
    LANE = 128
    SUB = {4: 8, 2: 16, 1: 32}.get(in_isz, 8)   # dtype-dependent sublane align

    in_full = _round_up(IN, LANE)
    out_full = _round_up(OUT, LANE)
    b_full = _round_up(B, SUB)

    # 256-aligned candidates below the full (padded) dim: v6e/v7x MXUs are
    # 2x 256x256, so 256 multiples keep systolic passes full (fine on v5e too).
    tk_cands = _candidates(in_full, (4096, 2048, 1024, 512, 256, 128))
    tn_cands = _candidates(out_full, (4096, 2048, 1024, 512, 256, 128))
    tm_cands = [t for t in _candidates(b_full, (1024, 512, 256, 128, 64, 32, 16, 8))
                if t % SUB == 0] or [b_full]

    best_key, best = None, None
    for tk in tk_cands:
        for tn in tn_cands:
            for tm in tm_cands:
                nk = _round_up(IN, tk) // tk
                use_acc = (not out_is_f32) and nk > 1
                need = (2 * tn * tk * in_isz        # weight (double-buffered)
                        + 2 * tm * tk * in_isz      # x
                        + 2 * tn * 4                # bias (f32)
                        + 2 * tm * tn * out_isz     # output
                        + (tm * tn * 4 if use_acc else 0))
                if need > budget:
                    continue
                bp, inp, outp = _round_up(B, tm), _round_up(IN, tk), _round_up(OUT, tn)
                ni, nj = bp // tm, outp // tn
                w_traf = outp * inp * in_isz * (ni if nk > 1 else 1)
                x_traf = bp * inp * in_isz * nj
                o_traf = bp * outp * out_isz
                key = (w_traf + x_traf + o_traf, nj * ni * nk, -tm, -tn, -tk)
                if best_key is None or key < best_key:
                    best_key, best = key, (tm, tn, tk, use_acc, need)

    if best is None:   # pathological budget: fall back to minimal legal tiles
        tm, tn, tk = min(tm_cands), 128, 128
        nk = _round_up(IN, tk) // tk
        use_acc = (not out_is_f32) and nk > 1
        need = (2 * tn * tk * in_isz + 2 * tm * tk * in_isz + 2 * tn * 4
                + 2 * tm * tn * out_isz + (tm * tn * 4 if use_acc else 0))
        best = (tm, tn, tk, use_acc, need)
    return best


# ----------------------------- wrapper ------------------------------------ #

def linear_relu(x, weight, bias=None):
    """x: (B, IN); weight: (OUT, IN) (PyTorch layout, no transpose needed);
    bias: (OUT,) or None.  Returns ReLU(x @ weight.T + bias), dtype of x."""
    B, IN = x.shape
    OUT, IN_w = weight.shape
    assert IN_w == IN, "weight must be (OUT, IN)"
    out_dtype = x.dtype
    if bias is None:
        bias = jnp.zeros((OUT,), jnp.float32)

    in_isz = jnp.dtype(x.dtype).itemsize
    out_isz = jnp.dtype(out_dtype).itemsize
    out_is_f32 = jnp.dtype(out_dtype) == jnp.float32

    vmem_cap = _vmem_capacity_bytes()
    budget = int(0.55 * vmem_cap)       # leave headroom for compiler scratch
    tm, tn, tk, use_acc, need = _plan_tiles(
        B, IN, OUT, in_isz, out_isz, out_is_f32, budget)

    # Zero-pad to tile multiples (exact for matmul + bias + ReLU; padded
    # rows/cols are sliced off below).
    Bp, INp, OUTp = _round_up(B, tm), _round_up(IN, tk), _round_up(OUT, tn)
    xp = jnp.pad(x, ((0, Bp - B), (0, INp - IN))) if (Bp, INp) != (B, IN) else x
    wp = (jnp.pad(weight, ((0, OUTp - OUT), (0, INp - IN)))
          if (OUTp, INp) != (OUT, IN) else weight)
    b2 = jnp.pad(bias, (0, OUTp - OUT)) if OUTp != OUT else bias
    b2 = b2.reshape(1, OUTp).astype(jnp.float32)

    grid = (OUTp // tn, Bp // tm, INp // tk)        # (j, i, k) -- k innermost

    kernel = _kernel_acc if use_acc else _kernel_direct
    scratch = [pltpu.VMEM((tm, tn), jnp.float32)] if use_acc else []

    # Explicit scoped-VMEM limit sized from the actual blocks (v5e default is
    # only 16 MiB); capped below the physical per-core capacity.
    vmem_limit = int(min(0.85 * vmem_cap, max(2 * need + (8 << 20), 32 << 20)))

    out_p = pl.pallas_call(
        kernel,
        out_shape=jax.ShapeDtypeStruct((Bp, OUTp), out_dtype),
        grid_spec=pltpu.PrefetchScalarGridSpec(
            num_scalar_prefetch=0,
            grid=grid,
            in_specs=[
                # x tile: constant along j (outermost), streams over (i, k).
                pl.BlockSpec((tm, tk), lambda j, i, k: (i, k)),
                # Weight tile, PyTorch (OUT, IN) layout: constant along i, so
                # with an unsplit K axis each W slab is DMA'd exactly once.
                pl.BlockSpec((tn, tk), lambda j, i, k: (j, k)),
                # Bias slab (f32): constant along i and k.
                pl.BlockSpec((1, tn), lambda j, i, k: (0, j)),
            ],
            # Output constant along k -> K-resident; written once per (i, j).
            out_specs=pl.BlockSpec((tm, tn), lambda j, i, k: (i, j)),
            scratch_shapes=scratch,
        ),
        compiler_params=pltpu.CompilerParams(
            # j (OUT tiles) outermost and "parallel": on v7x the two
            # TensorCores take different OUT halves, so weight HBM traffic is
            # not duplicated across cores.
            dimension_semantics=("parallel", "parallel", "arbitrary"),
            vmem_limit_bytes=vmem_limit,
        ),
    )(xp, wp, b2)

    if (Bp, OUTp) != (B, OUT):
        out_p = out_p[:B, :OUT]
    return out_p


# ----------------------------- init & demo --------------------------------- #

def init_params(key, inp, out, w_init_gain="relu", bias=True):
    """Xavier-uniform with calculate_gain('relu') = sqrt(2), matching the
    PyTorch module's _weights_init; default nn.Linear bias init."""
    kw, kb = jax.random.split(key)
    gain = jnp.sqrt(2.0) if w_init_gain == "relu" else 1.0
    bound = gain * jnp.sqrt(6.0 / (inp + out))
    weight = jax.random.uniform(kw, (out, inp), jnp.float32, -bound, bound)
    if bias:
        bb = 1.0 / jnp.sqrt(float(inp))
        b = jax.random.uniform(kb, (out,), jnp.float32, -bb, bb)
    else:
        b = jnp.zeros((out,), jnp.float32)
    return weight, b


if __name__ == "__main__":
    key = jax.random.PRNGKey(0)
    k_x, k_p = jax.random.split(key)

    # Small demo shapes; at this size the op is launch/DMA-overhead bound --
    # the tiling/planning pays off for wide layers and large batches.
    B, IN, OUT = 8, 32, 64
    x = jax.random.normal(k_x, (B, IN), jnp.float32)
    weight, bias = init_params(k_p, IN, OUT)

    y = linear_relu(x, weight, bias)
    jax.block_until_ready(y)

    # Reference check in plain JAX (same math as the PyTorch module forward).
    y_ref = jnp.maximum(x @ weight.T + bias, 0.0)
    assert y.shape == (B, OUT)
    assert jnp.allclose(y, y_ref, atol=1e-5, rtol=1e-5)

    print("KERNEL_OK")
</pallas_src>

<mosaic_0001>
module attributes {stable_mosaic.version = 11 : i64} {
  func.func @_kernel_direct(%arg0: i32, %arg1: i32, %arg2: i32, %arg3: memref<8x128xf32, #tpu.memory_space<vmem>>, %arg4: memref<128x128xf32, #tpu.memory_space<vmem>>, %arg5: memref<1x128xf32, #tpu.memory_space<vmem>>, %arg6: memref<8x128xf32, #tpu.memory_space<vmem>>) attributes {dimension_semantics = [#tpu.dimension_semantics<parallel>, #tpu.dimension_semantics<parallel>, #tpu.dimension_semantics<arbitrary>], iteration_bounds = array<i64: 1, 1, 1>, scalar_prefetch = 0 : i64, scratch_operands = 0 : i64, tpu.core_type = #tpu.core_type<tc>, window_params = [{transform_indices = @transform_0, window_bounds = array<i64: 8, 128>}, {transform_indices = @transform_1, window_bounds = array<i64: 128, 128>}, {transform_indices = @transform_2, window_bounds = array<i64: 1, 128>}, {transform_indices = @transform_3, window_bounds = array<i64: 8, 128>}]} {
    %c0_i32 = arith.constant 0 : i32
    %0 = arith.cmpi eq, %arg2, %c0_i32 : i32
    %1 = arith.extui %0 : i1 to i32
    %c0_i32_0 = arith.constant 0 : i32
    %2 = arith.cmpi ne, %1, %c0_i32_0 : i32
    scf.if %2 {
      %cst_10 = arith.constant 0.000000e+00 : f32
      %12 = vector.broadcast %cst_10 : f32 to vector<8x128xf32>
      %c0_11 = arith.constant 0 : index
      %c0_12 = arith.constant 0 : index
      %13 = vector.load %arg6[%c0_11, %c0_12] : memref<8x128xf32, #tpu.memory_space<vmem>>, vector<8x128xf32>
      tpu.vector_store %arg6[%c0_11, %c0_12], %12 {strides = array<i32>} : memref<8x128xf32, #tpu.memory_space<vmem>>, vector<8x128xf32>,
    } else {
    }
    %c0 = arith.constant 0 : index
    %c0_1 = arith.constant 0 : index
    %3 = vector.load %arg6[%c0, %c0_1] : memref<8x128xf32, #tpu.memory_space<vmem>>, vector<8x128xf32>
    %c0_2 = arith.constant 0 : index
    %c0_3 = arith.constant 0 : index
    %4 = vector.load %arg3[%c0_2, %c0_3] : memref<8x128xf32, #tpu.memory_space<vmem>>, vector<8x128xf32>
    %c0_4 = arith.constant 0 : index
    %c0_5 = arith.constant 0 : index
    %5 = vector.load %arg4[%c0_4, %c0_5] : memref<128x128xf32, #tpu.memory_space<vmem>>, vector<128x128xf32>
    %cst = arith.constant dense<0.000000e+00> : vector<8x128xf32>
    %6 = tpu.matmul %4, %5, %cst {dimension_numbers = #tpu.dot_dimension_numbers<[1], [1], [0], [0], [0, 0, 1, 0], [], []>} : vector<8x128xf32>, vector<128x128xf32>, vector<8x128xf32> -> vector<8x128xf32>
    %7 = arith.addf %3, %6 : vector<8x128xf32>
    %c0_6 = arith.constant 0 : index
    %c0_7 = arith.constant 0 : index
    %8 = vector.load %arg6[%c0_6, %c0_7] : memref<8x128xf32, #tpu.memory_space<vmem>>, vector<8x128xf32>
    tpu.vector_store %arg6[%c0_6, %c0_7], %7 {strides = array<i32>} : memref<8x128xf32, #tpu.memory_space<vmem>>, vector<8x128xf32>,
    %c0_i32_8 = arith.constant 0 : i32
    %9 = arith.cmpi eq, %arg2, %c0_i32_8 : i32
    %10 = arith.extui %9 : i1 to i32
    %c0_i32_9 = arith.constant 0 : i32
    %11 = arith.cmpi ne, %10, %c0_i32_9 : i32
    scf.if %11 {
      %c0_10 = arith.constant 0 : index
      %c0_11 = arith.constant 0 : index
      %12 = vector.load %arg6[%c0_10, %c0_11] : memref<8x128xf32, #tpu.memory_space<vmem>>, vector<8x128xf32>
      %c0_12 = arith.constant 0 : index
      %c0_13 = arith.constant 0 : index
      %13 = vector.load %arg5[%c0_12, %c0_13] : memref<1x128xf32, #tpu.memory_space<vmem>>, vector<1x128xf32>
      %14 = vector.broadcast %13 : vector<1x128xf32> to vector<8x128xf32>
      %15 = arith.addf %12, %14 : vector<8x128xf32>
      %cst_14 = arith.constant 0.000000e+00 : f32
      %16 = vector.broadcast %cst_14 : f32 to vector<8x128xf32>
      %17 = arith.maximumf %15, %16 : vector<8x128xf32>
      %c0_15 = arith.constant 0 : index
      %c0_16 = arith.constant 0 : index
      %18 = vector.load %arg6[%c0_15, %c0_16] : memref<8x128xf32, #tpu.memory_space<vmem>>, vector<8x128xf32>
      tpu.vector_store %arg6[%c0_15, %c0_16], %17 {strides = array<i32>} : memref<8x128xf32, #tpu.memory_space<vmem>>, vector<8x128xf32>,
    } else {
    }
    return
  }
  func.func @transform_0(%arg0: i32, %arg1: i32, %arg2: i32) -> (i32, i32) {
    %c0_i32 = arith.constant 0 : i32
    return %arg1, %arg2 : i32, i32
  }
  func.func @transform_1(%arg0: i32, %arg1: i32, %arg2: i32) -> (i32, i32) {
    %c0_i32 = arith.constant 0 : i32
    return %arg0, %arg2 : i32, i32
  }
  func.func @transform_2(%arg0: i32, %arg1: i32, %arg2: i32) -> (i32, i32) {
    %c0_i32 = arith.constant 0 : i32
    %c0_i32_0 = arith.constant 0 : i32
    return %c0_i32, %arg0 : i32, i32
  }
  func.func @transform_3(%arg0: i32, %arg1: i32, %arg2: i32) -> (i32, i32) {
    %c0_i32 = arith.constant 0 : i32
    return %arg1, %arg0 : i32, i32
  }
}

</mosaic_0001>

<bundles_post_ra>
// kernel: tpu_custom_call.1
= control target key start
LH: loop header
LB: loop body
LE: loop exit
PB: predicated region body
PF: predicated region fallthrough
CT: control target
= control target key end

     0   :  { %8 = vsyncpa [#allocation3], 0  ;;  %s397_s0 = inlined_call_operand.hbm [shape: f32[8,128], index: 0, kind: input, shape index: {}]   ;;  %s398_s1 = inlined_call_operand.hbm [shape: f32[128,128], index: 1, kind: input, shape index: {}]   ;;  %s399_s2 = inlined_call_operand.vmem [shape: f32[1,128], index: 2, kind: input, shape index: {}]   ;;  %s400_s3 = inlined_call_operand.hbm [shape: f32[8,128], index: 3, kind: output, shape index: {}]  }
   0x1   :  { %9 = vsyncpa [#allocation6], 0 }
   0x2   :  { %10 = vsyncpa [#allocation4], 0  ;;  %s323_s12 = smov [#allocation2]   ;;  %s324_s14 = smov [#allocation5]  }
   0x3   :  { %s17_s13 = sshll.u32 %s323_s12, 4  ;;  %s26_s15 = sshll.u32 %s324_s14, 4  ;;  %s18_s13 = int_to_ptr.vmem [resolvable:$true] %s17_s13  ;;  %s351_s15 = int_to_ptr.vmem [resolvable:$true] %s26_s15 }
   0x4   :  { %s251_s18 = scalar_lea.hbm %s397_s0, 128 }
   0x5   :  { %p252_p0 = scmp.ne.s32.totalorder %s397_s0, %s251_s18  ;;  %p255_p1 = scmp.lt.u32.totalorder %s251_s18, %s397_s0 }
   0x7   :  { %p257_p2 = pnand %p255_p1, %p252_p0 }
   0x9   :  { %260 = shalt.err (!%p257_p2)
}
   0xa   :  { %s261_s23 = scalar_lea.vmem %s18_s13, 128  ;;  %p266_p4 = scmp.lt.s32.totalorder %s18_s13, %s18_s13 }
   0xb   :  { %p262_p3 = scmp.ne.s32.totalorder %s18_s13, %s261_s23  ;;  %p267_p5 = scmp.lt.s32.totalorder %s261_s23, %s261_s23 }
   0xd   :  { %p268_p6 = por %p267_p5, %p266_p4 }
   0xf   :  { %p269_p7 = pnand %p268_p6, %p262_p3 }
  0x11   :  { %272 = shalt.err (!%p269_p7)
}
  0x12   :  { %20 = dma.hbm_to_vmem [thread:$0]  %s397_s0, 128, %s18_s13, [#allocation3]  }
  0x13   :  { %s273_s28 = scalar_lea.hbm %s398_s1, 2048 }
  0x14   :  { %p274_p8 = scmp.ne.s32.totalorder %s398_s1, %s273_s28  ;;  %p277_p9 = scmp.lt.u32.totalorder %s273_s28, %s398_s1 }
  0x16   :  { %p279_p10 = pnand %p277_p9, %p274_p8 }
  0x18   :  { %282 = shalt.err (!%p279_p10)
}
  0x19   :  { %s283_s6 = scalar_lea.vmem %s351_s15, 2048  ;;  %p288_p12 = scmp.lt.s32.totalorder %s351_s15, %s351_s15 }
  0x1a   :  { %p284_p11 = scmp.ne.s32.totalorder %s351_s15, %s283_s6  ;;  %p289_p13 = scmp.lt.s32.totalorder %s283_s6, %s283_s6 }
  0x1c   :  { %p290_p0 = por %p289_p13, %p288_p12 }
  0x1e   :  { %p291_p1 = pnand %p290_p0, %p284_p11 }
  0x20   :  { %294 = shalt.err (!%p291_p1)
}
  0x21   :  { %s325_s0 = smov 128   ;;  %s326_s7 = smov 8  }
  0x22   :  { %32 = dma.hbm_to_vmem [thread:$0]  %s398_s1, 2048, %s351_s15, [#allocation6], %s325_s0, %s325_s0, %s326_s7  }
  0x23   :  { %317 = dma.done.wait [#allocation3], 128  }
  0x24   :  { %318 = vsyncadd [#allocation3], 4294967168 }
  0x25   :  { %319 = dma.done.wait [#allocation6], 2048  }
  0x26   :  { %320 = vsyncadd [#allocation6], 4294965248  ;;  %v327_v0 = vmov 0.0|0.0   ;;  %vm328_vm0 = vmmov 0   ;;  %v329_v1 = vmov 0.0   ;;  %v48_v2 = vld [vmem:[#allocation5] sm:$0xff] }
  0x27   :  { %219 = vmatprep.subr.bf16.mxu0 %v327_v0  ;;  %216 = vmatprep.mubr.msk.f32.mxu0 %vm328_vm0, %v329_v1  ;;  %v49_v3 = vld [vmem:[#allocation5 + $0x8] sm:$0xff]  ;;  %v50_v5 = vld [vmem:[#allocation5 + $0x10] sm:$0xff]  ;;  %v51_v6 = vld [vmem:[#allocation5 + $0x18] sm:$0xff]  ;;  %s330_s11 = smov [#allocation7]  }
  0x28   :  { %v220_v4 = vpack.c.bf16 %v49_v3, %v48_v2  ;;  %v223_v7 = vpack.c.bf16 %v51_v6, %v50_v5  ;;  %v52_v8 = vld [vmem:[#allocation5 + $0x20] sm:$0xff]  ;;  %v53_v9 = vld [vmem:[#allocation5 + $0x28] sm:$0xff]  ;;  %v54_v11 = vld [vmem:[#allocation5 + $0x30] sm:$0xff]  ;;  %s156_s12 = sshll.u32 %s330_s11, 4  ;;  %s157_s12 = int_to_ptr.vmem [resolvable:$true] %s156_s12 }
  0x29   :  { %v226_v10 = vpack.c.bf16 %v53_v9, %v52_v8  ;;  %v55_v12 = vld [vmem:[#allocation5 + $0x38] sm:$0xff]  ;;  %v56_v14 = vld [vmem:[#allocation5 + $0x40] sm:$0xff]  ;;  %v57_v15 = vld [vmem:[#allocation5 + $0x48] sm:$0xff]  ;;  %s295_s13 = scalar_lea.vmem %s157_s12, 128  ;;  %p300_p3 = scmp.lt.s32.totalorder %s157_s12, %s157_s12 }
  0x2a   :  { %221 = vmatpush3.bf16.xpose.msra.mxu0 %v220_v4  ;;  %v229_v13 = vpack.c.bf16 %v55_v12, %v54_v11  ;;  %v232_v16 = vpack.c.bf16 %v57_v15, %v56_v14  ;;  %v58_v17 = vld [vmem:[#allocation5 + $0x50] sm:$0xff]  ;;  %v59_v18 = vld [vmem:[#allocation5 + $0x58] sm:$0xff]  ;;  %v60_v20 = vld [vmem:[#allocation5 + $0x60] sm:$0xff]  ;;  %p296_p2 = scmp.ne.s32.totalorder %s157_s12, %s295_s13  ;;  %p301_p4 = scmp.lt.s32.totalorder %s295_s13, %s295_s13 }
  0x2b   :  { %222 = vmatprep.subr.bf16.mxu0 %v327_v0  ;;  %v235_v19 = vpack.c.bf16 %v59_v18, %v58_v17  ;;  %v61_v21 = vld [vmem:[#allocation5 + $0x68] sm:$0xff]  ;;  %v62_v23 = vld [vmem:[#allocation5 + $0x70] sm:$0xff]  ;;  %v63_v24 = vld [vmem:[#allocation5 + $0x78] sm:$0xff] }
  0x2c   :  { %v238_v22 = vpack.c.bf16 %v61_v21, %v60_v20  ;;  %v241_v25 = vpack.c.bf16 %v63_v24, %v62_v23  ;;  %v47_v26 = vld [vmem:[#allocation2] sm:$0xff]  ;;  %p302_p5 = por %p301_p4, %p300_p3 }
  0x2d   :  { %v166_v28 = vld [vmem:[%s399_s2] ss:$0 sm:$0xff] }
  0x2e   :  { %p303_p6 = pnand %p302_p5, %p296_p2 }
  0x32   :  { %224 = vmatpush3.bf16.xpose.msra.mxu0 %v223_v7 }
  0x33   :  { %225 = vmatprep.subr.bf16.mxu0 %v327_v0 }
  0x3a   :  { %227 = vmatpush3.bf16.xpose.msra.mxu0 %v226_v10 }
  0x3b   :  { %228 = vmatprep.subr.bf16.mxu0 %v327_v0 }
  0x42   :  { %230 = vmatpush3.bf16.xpose.msra.mxu0 %v229_v13 }
  0x43   :  { %231 = vmatprep.subr.bf16.mxu0 %v327_v0 }
  0x4a   :  { %233 = vmatpush3.bf16.xpose.msra.mxu0 %v232_v16 }
  0x4b   :  { %234 = vmatprep.subr.bf16.mxu0 %v327_v0 }
  0x52   :  { %236 = vmatpush3.bf16.xpose.msra.mxu0 %v235_v19 }
  0x53   :  { %237 = vmatprep.subr.bf16.mxu0 %v327_v0 }
  0x5a   :  { %239 = vmatpush3.bf16.xpose.msra.mxu0 %v238_v22 }
  0x5b   :  { %240 = vmatprep.subr.bf16.mxu0 %v327_v0 }
  0x62   :  { %242 = vmatpush3.bf16.xpose.msra.mxu0 %v241_v25 }
  0x69   :  { %217 = vmatmul.mubr.f32.vlgmr.msra.gmra.mrb[0].mxu0 %v47_v26 }
 0x13c   :  { %v130_v27 = vpop.f32.mrb[0].mxu0 }
 0x13d   :  { %v218_v29 = vpop.f32.mrb[1].mxu0  ;;  %v147_v30 = vadd.f32 %v166_v28, %v130_v27 }
 0x13f   :  { %v148_v31 = vmax.f32 %v147_v30, 0.0 }
 0x141   :  { %149 = vst [vmem:[#allocation7] sm:$0xff] %v148_v31 }
 0x142   :  { %306 = shalt.err (!%p303_p6)
}
 0x143   :  { %s307_s16 = scalar_lea.hbm %s400_s3, 128 }
 0x144   :  { %p308_p7 = scmp.ne.s32.totalorder %s400_s3, %s307_s16  ;;  %p311_p8 = scmp.lt.u32.totalorder %s307_s16, %s400_s3 }
 0x146   :  { %p313_p9 = pnand %p311_p8, %p308_p7 }
 0x148   :  { %316 = shalt.err (!%p313_p9)
}
 0x149   :  { %159 = dma.vmem_to_hbm [thread:$0]  %s157_s12, 128, %s400_s3, [#allocation4]  }
 0x14a   :  { %321 = dma.done.wait [#allocation4], 128  }
 0x14b   :  { %322 = vsyncadd [#allocation4], 4294967168 }
 0x14c   :  { %163 = vsyncpa [#allocation3], 1 }
 0x14d   :  { %164 = vsyncpa [#allocation6], 1 }
 0x14e   :  { %165 = vsyncpa [#allocation4], 1 }

</bundles_post_ra>
